<compile_context>
chip_gen: v7x
topology: tpu7x:2x2x1
jax: 0.10.0
libtpu: 0.0.40
codegen_flags: <defaults>
</compile_context>

<pallas_src>
import functools

import jax
import jax.numpy as jnp
from jax.experimental import pallas as pl
from jax.experimental.pallas import tpu as pltpu


NEG_SLOPE = 0.01  # PyTorch nn.LeakyReLU default


def _leaky_relu(h):
    return jnp.where(h > 0, h, NEG_SLOPE * h)


def _round_up(x, m):
    return ((x + m - 1) // m) * m


def dis_kernel(x_ref,
               w1_ref, b1_ref,
               w2_ref, b2_ref,
               w3_ref, b3_ref,
               w4t_ref, b4_ref,
               o_ref, r_ref):
    """Fused 4-layer MLP + reward epilogue, entirely in VMEM.

    x_ref:       (tile, K_pad)  bf16   (zero-padded features)
    w1..w3:      (in, out)      bf16   MXU operands
    b1..b3:      (1, out)       f32    bias add in f32 on the VPU
    w4t_ref:     (1, 128)       f32    last layer weight, pre-transposed
    b4_ref:      (1, 1)         f32
    o_ref:       (tile, 1)      f32    forward() output (logits)
    r_ref:       (tile, 1)      f32    reward() output = (sigmoid(out)-0.5)*2
    """
    # Layer 1: bf16 x bf16 -> f32 on the MXU; bias + LeakyReLU in f32.
    h = jnp.dot(x_ref[...], w1_ref[...], preferred_element_type=jnp.float32)
    h = _leaky_relu(h + b1_ref[...])

    # Layer 2
    h = jnp.dot(h.astype(jnp.bfloat16), w2_ref[...],
                preferred_element_type=jnp.float32)
    h = _leaky_relu(h + b2_ref[...])

    # Layer 3
    h = jnp.dot(h.astype(jnp.bfloat16), w3_ref[...],
                preferred_element_type=jnp.float32)
    h = _leaky_relu(h + b3_ref[...])

    # Layer 4 (K=128, N=1): VPU multiply + XLU lane reduction instead of a
    # 1-column MXU matmul.  Kept in f32.
    h4 = jnp.sum(h * w4t_ref[...], axis=-1, keepdims=True) + b4_ref[...]
    out = _leaky_relu(h4)

    o_ref[...] = out
    # Fused reward epilogue (EUP sigmoid slot is otherwise idle).
    r_ref[...] = (jax.nn.sigmoid(out) - 0.5) * 2.0


@functools.partial(jax.jit, static_argnames=("batch_tile",))
def _dis_pallas(x, w1, b1, w2, b2, w3, b3, w4, b4, *, batch_tile=512):
    """Runs the fused MLP. Returns (logits, reward), each (B, 1) float32."""
    B, n_features = x.shape

    # ---- batch tiling: pad B, pick a tile that fills the MXU M dimension ----
    # batch_tile must be a multiple of 16 (bf16 sublane tiling) and <= 2048 so
    # the widest intermediate (tile, 512) f32 stays comfortably inside scoped
    # VMEM on every TPU generation.
    batch_tile = min(max(16, (batch_tile // 16) * 16), 2048)
    tile = min(batch_tile, _round_up(B, 8))
    B_pad = _round_up(B, tile)

    # ---- feature padding: make the x tile lane-dense (multiple of 128) ----
    K_pad = max(128, _round_up(n_features, 128))

    x_p = jnp.pad(x, ((0, B_pad - B), (0, K_pad - n_features))).astype(jnp.bfloat16)
    w1_p = jnp.pad(w1, ((0, K_pad - n_features), (0, 0))).astype(jnp.bfloat16)
    w2_c = w2.astype(jnp.bfloat16)
    w3_c = w3.astype(jnp.bfloat16)
    # Last layer: pass as a (1, 128) f32 row (VPU path, not MXU).
    w4t = w4.astype(jnp.float32).T  # (1, 128)

    b1_c = b1.astype(jnp.float32)
    b2_c = b2.astype(jnp.float32)
    b3_c = b3.astype(jnp.float32)
    b4_c = b4.astype(jnp.float32)

    def full_spec(shape):
        ndim = len(shape)
        return pl.BlockSpec(shape, lambda i: (0,) * ndim)

    grid = (B_pad // tile,)

    out_pad, reward_pad = pl.pallas_call(
        dis_kernel,
        out_shape=(jax.ShapeDtypeStruct((B_pad, 1), jnp.float32),
                   jax.ShapeDtypeStruct((B_pad, 1), jnp.float32)),
        grid_spec=pltpu.PrefetchScalarGridSpec(
            num_scalar_prefetch=0,
            grid=grid,
            in_specs=[
                pl.BlockSpec((tile, K_pad), lambda i: (i, 0)),
                full_spec(w1_p.shape), full_spec(b1_c.shape),
                full_spec(w2_c.shape), full_spec(b2_c.shape),
                full_spec(w3_c.shape), full_spec(b3_c.shape),
                full_spec(w4t.shape), full_spec(b4_c.shape),
            ],
            out_specs=[
                pl.BlockSpec((tile, 1), lambda i: (i, 0)),
                pl.BlockSpec((tile, 1), lambda i: (i, 0)),
            ],
        ),
        compiler_params=pltpu.CompilerParams(
            # With >= 2 batch tiles this shards across both v7x TensorCores.
            dimension_semantics=("parallel",),
        ),
    )(x_p, w1_p, b1_c, w2_c, b2_c, w3_c, b3_c, w4t, b4_c)

    return out_pad[:B], reward_pad[:B]


def dis_forward(x, params, *, batch_tile=512):
    """Equivalent of Dis.forward: returns (B, 1) logits."""
    (w1, b1), (w2, b2), (w3, b3), (w4, b4) = params
    out, _ = _dis_pallas(x, w1, b1, w2, b2, w3, b3, w4, b4,
                         batch_tile=batch_tile)
    return out


def dis_reward(x, params, *, batch_tile=512):
    """Equivalent of Dis.reward: (sigmoid(forward(x)) - 0.5) * 2, fused."""
    (w1, b1), (w2, b2), (w3, b3), (w4, b4) = params
    _, reward = _dis_pallas(x, w1, b1, w2, b2, w3, b3, w4, b4,
                            batch_tile=batch_tile)
    return reward


def init_params(key, n_features, layers=(512, 256, 128)):
    """PyTorch-default-style init: U(-1/sqrt(fan_in), 1/sqrt(fan_in)).

    Weights stored as (in, out) so the kernel computes h @ W + b.
    """
    dims = [n_features] + list(layers) + [1]
    params = []
    for i in range(len(dims) - 1):
        fan_in, fan_out = dims[i], dims[i + 1]
        key, kw, kb = jax.random.split(key, 3)
        bound = 1.0 / jnp.sqrt(fan_in)
        w = jax.random.uniform(kw, (fan_in, fan_out), jnp.float32, -bound, bound)
        b = jax.random.uniform(kb, (1, fan_out), jnp.float32, -bound, bound)
        params.append((w, b))
    return params


def dis_forward_ref(x, params):
    """Pure-JAX reference mirroring the kernel numerics (bf16 MXU operands,
    f32 accumulation, f32 bias/LeakyReLU, f32 final layer)."""
    (w1, b1), (w2, b2), (w3, b3), (w4, b4) = params
    h = x
    for w, b in ((w1, b1), (w2, b2), (w3, b3)):
        h = jnp.dot(h.astype(jnp.bfloat16), w.astype(jnp.bfloat16),
                    preferred_element_type=jnp.float32) + b
        h = _leaky_relu(h)
    h = jnp.dot(h, w4.astype(jnp.float32)) + b4
    return _leaky_relu(h)


if __name__ == "__main__":
    key = jax.random.PRNGKey(0)
    k_params, k_x = jax.random.split(key)

    batch = 8
    n_features = 32

    params = init_params(k_params, n_features, layers=(512, 256, 128))
    x = jax.random.normal(k_x, (batch, n_features), jnp.float32)

    out = dis_forward(x, params)
    out = jax.block_until_ready(out)
    reward = dis_reward(x, params)
    reward = jax.block_until_ready(reward)

    ref = dis_forward_ref(x, params)
    ref_reward = (jax.nn.sigmoid(ref) - 0.5) * 2.0

    assert out.shape == (batch, 1), out.shape
    assert reward.shape == (batch, 1), reward.shape
    assert jnp.allclose(out, ref, atol=1e-2, rtol=1e-2), (
        f"max abs err (forward) = {jnp.max(jnp.abs(out - ref))}")
    assert jnp.allclose(reward, ref_reward, atol=1e-2, rtol=1e-2), (
        f"max abs err (reward) = {jnp.max(jnp.abs(reward - ref_reward))}")

    print("KERNEL_OK")
</pallas_src>

<mosaic_0001>
module attributes {stable_mosaic.version = 11 : i64} {
  func.func @dis_kernel(%arg0: i32, %arg1: memref<8x128xbf16, #tpu.memory_space<vmem>>, %arg2: memref<128x512xbf16, #tpu.memory_space<vmem>>, %arg3: memref<1x512xf32, #tpu.memory_space<vmem>>, %arg4: memref<512x256xbf16, #tpu.memory_space<vmem>>, %arg5: memref<1x256xf32, #tpu.memory_space<vmem>>, %arg6: memref<256x128xbf16, #tpu.memory_space<vmem>>, %arg7: memref<1x128xf32, #tpu.memory_space<vmem>>, %arg8: memref<1x128xf32, #tpu.memory_space<vmem>>, %arg9: memref<1x1xf32, #tpu.memory_space<vmem>>, %arg10: memref<8x1xf32, #tpu.memory_space<vmem>>, %arg11: memref<8x1xf32, #tpu.memory_space<vmem>>) attributes {dimension_semantics = [#tpu.dimension_semantics<parallel>], iteration_bounds = array<i64: 1>, scalar_prefetch = 0 : i64, scratch_operands = 0 : i64, tpu.core_type = #tpu.core_type<tc>, window_params = [{transform_indices = @transform_0, window_bounds = array<i64: 8, 128>}, {pipeline_mode = #tpu.pipeline_mode<synchronous>, transform_indices = @transform_1, window_bounds = array<i64: 128, 512>}, {pipeline_mode = #tpu.pipeline_mode<synchronous>, transform_indices = @transform_2, window_bounds = array<i64: 1, 512>}, {pipeline_mode = #tpu.pipeline_mode<synchronous>, transform_indices = @transform_3, window_bounds = array<i64: 512, 256>}, {pipeline_mode = #tpu.pipeline_mode<synchronous>, transform_indices = @transform_4, window_bounds = array<i64: 1, 256>}, {pipeline_mode = #tpu.pipeline_mode<synchronous>, transform_indices = @transform_5, window_bounds = array<i64: 256, 128>}, {pipeline_mode = #tpu.pipeline_mode<synchronous>, transform_indices = @transform_6, window_bounds = array<i64: 1, 128>}, {pipeline_mode = #tpu.pipeline_mode<synchronous>, transform_indices = @transform_7, window_bounds = array<i64: 1, 128>}, {pipeline_mode = #tpu.pipeline_mode<synchronous>, transform_indices = @transform_8, window_bounds = array<i64: 1, 1>}, {transform_indices = @transform_9, window_bounds = array<i64: 8, 1>}, {transform_indices = @transform_10, window_bounds = array<i64: 8, 1>}]} {
    %c0 = arith.constant 0 : index
    %c0_0 = arith.constant 0 : index
    %0 = vector.load %arg1[%c0, %c0_0] : memref<8x128xbf16, #tpu.memory_space<vmem>>, vector<8x128xbf16>
    %c0_1 = arith.constant 0 : index
    %c0_2 = arith.constant 0 : index
    %1 = vector.load %arg2[%c0_1, %c0_2] : memref<128x512xbf16, #tpu.memory_space<vmem>>, vector<128x512xbf16>
    %cst = arith.constant dense<0.000000e+00> : vector<8x512xf32>
    %2 = tpu.matmul %0, %1, %cst {dimension_numbers = #tpu.dot_dimension_numbers<[1], [0], [0], [1], [0, 0, 1, 1], [], []>} : vector<8x128xbf16>, vector<128x512xbf16>, vector<8x512xf32> -> vector<8x512xf32>
    %c0_3 = arith.constant 0 : index
    %c0_4 = arith.constant 0 : index
    %3 = vector.load %arg3[%c0_3, %c0_4] : memref<1x512xf32, #tpu.memory_space<vmem>>, vector<1x512xf32>
    %4 = vector.broadcast %3 : vector<1x512xf32> to vector<8x512xf32>
    %5 = arith.addf %2, %4 : vector<8x512xf32>
    %cst_5 = arith.constant 0.000000e+00 : f32
    %6 = vector.broadcast %cst_5 : f32 to vector<8x512xf32>
    %7 = arith.cmpf ogt, %5, %6 : vector<8x512xf32>
    %cst_6 = arith.constant 0.00999999977 : f32
    %8 = vector.broadcast %cst_6 : f32 to vector<8x512xf32>
    %9 = arith.mulf %8, %5 : vector<8x512xf32>
    %10 = arith.select %7, %5, %9 : vector<8x512xi1>, vector<8x512xf32>
    %11 = arith.truncf %10 : vector<8x512xf32> to vector<8x512xbf16>
    %c0_7 = arith.constant 0 : index
    %c0_8 = arith.constant 0 : index
    %12 = vector.load %arg4[%c0_7, %c0_8] : memref<512x256xbf16, #tpu.memory_space<vmem>>, vector<512x256xbf16>
    %cst_9 = arith.constant dense<0.000000e+00> : vector<8x256xf32>
    %13 = tpu.matmul %11, %12, %cst_9 {dimension_numbers = #tpu.dot_dimension_numbers<[1], [0], [0], [1], [0, 0, 1, 1], [], []>} : vector<8x512xbf16>, vector<512x256xbf16>, vector<8x256xf32> -> vector<8x256xf32>
    %c0_10 = arith.constant 0 : index
    %c0_11 = arith.constant 0 : index
    %14 = vector.load %arg5[%c0_10, %c0_11] : memref<1x256xf32, #tpu.memory_space<vmem>>, vector<1x256xf32>
    %15 = vector.broadcast %14 : vector<1x256xf32> to vector<8x256xf32>
    %16 = arith.addf %13, %15 : vector<8x256xf32>
    %cst_12 = arith.constant 0.000000e+00 : f32
    %17 = vector.broadcast %cst_12 : f32 to vector<8x256xf32>
    %18 = arith.cmpf ogt, %16, %17 : vector<8x256xf32>
    %cst_13 = arith.constant 0.00999999977 : f32
    %19 = vector.broadcast %cst_13 : f32 to vector<8x256xf32>
    %20 = arith.mulf %19, %16 : vector<8x256xf32>
    %21 = arith.select %18, %16, %20 : vector<8x256xi1>, vector<8x256xf32>
    %22 = arith.truncf %21 : vector<8x256xf32> to vector<8x256xbf16>
    %c0_14 = arith.constant 0 : index
    %c0_15 = arith.constant 0 : index
    %23 = vector.load %arg6[%c0_14, %c0_15] : memref<256x128xbf16, #tpu.memory_space<vmem>>, vector<256x128xbf16>
    %cst_16 = arith.constant dense<0.000000e+00> : vector<8x128xf32>
    %24 = tpu.matmul %22, %23, %cst_16 {dimension_numbers = #tpu.dot_dimension_numbers<[1], [0], [0], [1], [0, 0, 1, 1], [], []>} : vector<8x256xbf16>, vector<256x128xbf16>, vector<8x128xf32> -> vector<8x128xf32>
    %c0_17 = arith.constant 0 : index
    %c0_18 = arith.constant 0 : index
    %25 = vector.load %arg7[%c0_17, %c0_18] : memref<1x128xf32, #tpu.memory_space<vmem>>, vector<1x128xf32>
    %26 = vector.broadcast %25 : vector<1x128xf32> to vector<8x128xf32>
    %27 = arith.addf %24, %26 : vector<8x128xf32>
    %cst_19 = arith.constant 0.000000e+00 : f32
    %28 = vector.broadcast %cst_19 : f32 to vector<8x128xf32>
    %29 = arith.cmpf ogt, %27, %28 : vector<8x128xf32>
    %cst_20 = arith.constant 0.00999999977 : f32
    %30 = vector.broadcast %cst_20 : f32 to vector<8x128xf32>
    %31 = arith.mulf %30, %27 : vector<8x128xf32>
    %32 = arith.select %29, %27, %31 : vector<8x128xi1>, vector<8x128xf32>
    %c0_21 = arith.constant 0 : index
    %c0_22 = arith.constant 0 : index
    %33 = vector.load %arg8[%c0_21, %c0_22] : memref<1x128xf32, #tpu.memory_space<vmem>>, vector<1x128xf32>
    %34 = vector.broadcast %33 : vector<1x128xf32> to vector<8x128xf32>
    %35 = arith.mulf %32, %34 : vector<8x128xf32>
    %cst_23 = arith.constant dense<0.000000e+00> : vector<8xf32>
    %36 = vector.multi_reduction <add>, %35, %cst_23 [1] : vector<8x128xf32> to vector<8xf32>
    %37 = vector.shape_cast %36 : vector<8xf32> to vector<8x1xf32>
    %c0_24 = arith.constant 0 : index
    %c0_25 = arith.constant 0 : index
    %38 = vector.load %arg9[%c0_24, %c0_25] : memref<1x1xf32, #tpu.memory_space<vmem>>, vector<1x1xf32>
    %39 = vector.broadcast %38 : vector<1x1xf32> to vector<8x1xf32>
    %40 = arith.addf %37, %39 : vector<8x1xf32>
    %cst_26 = arith.constant 0.000000e+00 : f32
    %41 = vector.broadcast %cst_26 : f32 to vector<8x1xf32>
    %42 = arith.cmpf ogt, %40, %41 : vector<8x1xf32>
    %cst_27 = arith.constant 0.00999999977 : f32
    %43 = vector.broadcast %cst_27 : f32 to vector<8x1xf32>
    %44 = arith.mulf %43, %40 : vector<8x1xf32>
    %45 = arith.select %42, %40, %44 : vector<8x1xi1>, vector<8x1xf32>
    %c0_28 = arith.constant 0 : index
    %c0_29 = arith.constant 0 : index
    %46 = vector.load %arg10[%c0_28, %c0_29] : memref<8x1xf32, #tpu.memory_space<vmem>>, vector<8x1xf32>
    tpu.vector_store %arg10[%c0_28, %c0_29], %45 {strides = array<i32>} : memref<8x1xf32, #tpu.memory_space<vmem>>, vector<8x1xf32>,
    %47 = arith.negf %45 : vector<8x1xf32>
    %48 = math.exp %47 : vector<8x1xf32>
    %cst_30 = arith.constant 1.000000e+00 : f32
    %49 = vector.broadcast %cst_30 : f32 to vector<8x1xf32>
    %50 = arith.addf %49, %48 : vector<8x1xf32>
    %51 = arith.divf %49, %50 : vector<8x1xf32>
    %cst_31 = arith.constant 5.000000e-01 : f32
    %52 = vector.broadcast %cst_31 : f32 to vector<8x1xf32>
    %53 = arith.subf %51, %52 : vector<8x1xf32>
    %cst_32 = arith.constant 2.000000e+00 : f32
    %54 = vector.broadcast %cst_32 : f32 to vector<8x1xf32>
    %55 = arith.mulf %53, %54 : vector<8x1xf32>
    %c0_33 = arith.constant 0 : index
    %c0_34 = arith.constant 0 : index
    %56 = vector.load %arg11[%c0_33, %c0_34] : memref<8x1xf32, #tpu.memory_space<vmem>>, vector<8x1xf32>
    tpu.vector_store %arg11[%c0_33, %c0_34], %55 {strides = array<i32>} : memref<8x1xf32, #tpu.memory_space<vmem>>, vector<8x1xf32>,
    return
  }
  func.func @transform_0(%arg0: i32) -> (i32, i32) {
    %c0_i32 = arith.constant 0 : i32
    %c0_i32_0 = arith.constant 0 : i32
    return %arg0, %c0_i32 : i32, i32
  }
  func.func @transform_1(%arg0: i32) -> (i32, i32) {
    %c0_i32 = arith.constant 0 : i32
    %c0_i32_0 = arith.constant 0 : i32
    %c0_i32_1 = arith.constant 0 : i32
    return %c0_i32, %c0_i32_0 : i32, i32
  }
  func.func @transform_2(%arg0: i32) -> (i32, i32) {
    %c0_i32 = arith.constant 0 : i32
    %c0_i32_0 = arith.constant 0 : i32
    %c0_i32_1 = arith.constant 0 : i32
    return %c0_i32, %c0_i32_0 : i32, i32
  }
  func.func @transform_3(%arg0: i32) -> (i32, i32) {
    %c0_i32 = arith.constant 0 : i32
    %c0_i32_0 = arith.constant 0 : i32
    %c0_i32_1 = arith.constant 0 : i32
    return %c0_i32, %c0_i32_0 : i32, i32
  }
  func.func @transform_4(%arg0: i32) -> (i32, i32) {
    %c0_i32 = arith.constant 0 : i32
    %c0_i32_0 = arith.constant 0 : i32
    %c0_i32_1 = arith.constant 0 : i32
    return %c0_i32, %c0_i32_0 : i32, i32
  }
  func.func @transform_5(%arg0: i32) -> (i32, i32) {
    %c0_i32 = arith.constant 0 : i32
    %c0_i32_0 = arith.constant 0 : i32
    %c0_i32_1 = arith.constant 0 : i32
    return %c0_i32, %c0_i32_0 : i32, i32
  }
  func.func @transform_6(%arg0: i32) -> (i32, i32) {
    %c0_i32 = arith.constant 0 : i32
    %c0_i32_0 = arith.constant 0 : i32
    %c0_i32_1 = arith.constant 0 : i32
    return %c0_i32, %c0_i32_0 : i32, i32
  }
  func.func @transform_7(%arg0: i32) -> (i32, i32) {
    %c0_i32 = arith.constant 0 : i32
    %c0_i32_0 = arith.constant 0 : i32
    %c0_i32_1 = arith.constant 0 : i32
    return %c0_i32, %c0_i32_0 : i32, i32
  }
  func.func @transform_8(%arg0: i32) -> (i32, i32) {
    %c0_i32 = arith.constant 0 : i32
    %c0_i32_0 = arith.constant 0 : i32
    %c0_i32_1 = arith.constant 0 : i32
    return %c0_i32, %c0_i32_0 : i32, i32
  }
  func.func @transform_9(%arg0: i32) -> (i32, i32) {
    %c0_i32 = arith.constant 0 : i32
    %c0_i32_0 = arith.constant 0 : i32
    return %arg0, %c0_i32 : i32, i32
  }
  func.func @transform_10(%arg0: i32) -> (i32, i32) {
    %c0_i32 = arith.constant 0 : i32
    %c0_i32_0 = arith.constant 0 : i32
    return %arg0, %c0_i32 : i32, i32
  }
}

</mosaic_0001>

<bundles_post_ra>
// kernel: _dis_pallas.1
= control target key start
LH: loop header
LB: loop body
LE: loop exit
PB: predicated region body
PF: predicated region fallthrough
CT: control target
= control target key end

     0   :  { %v1364_v1 = vmov 0   ;;  %vm1035_vm8 = vcmask 7168   ;;  %s1804_s1 = inlined_call_operand.vmem [shape: bf16[128,512], index: 1, kind: input, shape index: {}]   ;;  %s1805_s3 = inlined_call_operand.vmem [shape: bf16[512,256], index: 3, kind: input, shape index: {}]   ;;  %s1806_s0 = inlined_call_operand.vmem [shape: bf16[8,128], index: 0, kind: input, shape index: {}]   ;;  %s1807_s5 = inlined_call_operand.vmem [shape: bf16[256,128], index: 5, kind: input, shape index: {}]   ;;  %s1808_s2 = inlined_call_operand.vmem [shape: f32[1,512], index: 2, kind: input, shape index: {}]   ;;  %s1809_s4 = inlined_call_operand.vmem [shape: f32[1,256], index: 4, kind: input, shape index: {}]   ;;  %s1810_s8 = inlined_call_operand.<no memory space> [shape: f32[1,1], index: 8, kind: input, shape index: {}]   ;;  %s1811_s6 = inlined_call_operand.vmem [shape: f32[1,128], index: 6, kind: input, shape index: {}]   ;;  %s1812_s7 = inlined_call_operand.vmem [shape: f32[1,128], index: 7, kind: input, shape index: {}]   ;;  %s1813_s9 = inlined_call_operand.vmem [shape: f32[8,1], index: 9, kind: output, shape index: {0}]   ;;  %s1814_s10 = inlined_call_operand.vmem [shape: f32[8,1], index: 10, kind: output, shape index: {1}]  }
   0x1   :  { %v1200_v0 = vld [vmem:[%s1804_s1 + $0x4] ss:$16 sps:$4 sm:$0xff]   ;;  %284 = vmatprep.mubr.bf16.mxu1 %v1364_v1  ;;  %v1202_v2 = vld [vmem:[%s1804_s1] ss:$16 sps:$4 sm:$0xff]   ;;  %v1226_v22 = vld [vmem:[%s1804_s1 + $0xc] ss:$16 sps:$4 sm:$0xff]  }
   0x2   :  { %252 = vmatprep.subr.bf16.mxu1 %v1200_v0  ;;  %v1203_v3 = vld [vmem:[%s1804_s1 + $0x24] ss:$16 sps:$4 sm:$0xff]   ;;  %v1205_v4 = vld [vmem:[%s1804_s1 + $0x20] ss:$16 sps:$4 sm:$0xff]   ;;  %v1224_v26 = vld [vmem:[%s1804_s1 + $0x8] ss:$16 sps:$4 sm:$0xff]  }
   0x3   :  { %253 = vmatpush1.bf16.msra.mxu1 %v1202_v2  ;;  %v1206_v5 = vld [vmem:[%s1804_s1 + $0x44] ss:$16 sps:$4 sm:$0xff]   ;;  %v1208_v6 = vld [vmem:[%s1804_s1 + $0x40] ss:$16 sps:$4 sm:$0xff]   ;;  %v1229_v27 = vld [vmem:[%s1804_s1 + $0x2c] ss:$16 sps:$4 sm:$0xff]  }
   0x4   :  { %254 = vmatprep.subr.bf16.mxu1 %v1203_v3  ;;  %v1209_v7 = vld [vmem:[%s1804_s1 + $0x64] ss:$16 sps:$4 sm:$0xff]   ;;  %v1211_v8 = vld [vmem:[%s1804_s1 + $0x60] ss:$16 sps:$4 sm:$0xff]   ;;  %v1227_v30 = vld [vmem:[%s1804_s1 + $0x28] ss:$16 sps:$4 sm:$0xff]  }
   0x5   :  { %v1212_v9 = vld [vmem:[%s1804_s1 + $0x84] ss:$16 sps:$4 sm:$0xff]   ;;  %v1214_v10 = vld [vmem:[%s1804_s1 + $0x80] ss:$16 sps:$4 sm:$0xff]   ;;  %v1232_v31 = vld [vmem:[%s1804_s1 + $0x4c] ss:$16 sps:$4 sm:$0xff]  }
   0x6   :  { %v1215_v11 = vld [vmem:[%s1804_s1 + $0xa4] ss:$16 sps:$4 sm:$0xff]   ;;  %v1217_v12 = vld [vmem:[%s1804_s1 + $0xa0] ss:$16 sps:$4 sm:$0xff]   ;;  %v1230_v33 = vld [vmem:[%s1804_s1 + $0x48] ss:$16 sps:$4 sm:$0xff]  }
   0x7   :  { %255 = vmatpush1.bf16.msra.mxu1 %v1205_v4  ;;  %v1218_v13 = vld [vmem:[%s1804_s1 + $0xc4] ss:$16 sps:$4 sm:$0xff]   ;;  %v1220_v14 = vld [vmem:[%s1804_s1 + $0xc0] ss:$16 sps:$4 sm:$0xff]   ;;  %v1235_v35 = vld [vmem:[%s1804_s1 + $0x6c] ss:$16 sps:$4 sm:$0xff]  }
   0x8   :  { %256 = vmatprep.subr.bf16.mxu1 %v1206_v5  ;;  %v1248_v15 = vld [vmem:[%s1805_s3 + $0x4] ss:$8 sps:$4 sm:$0xff]   ;;  %v1250_v16 = vld [vmem:[%s1805_s3] ss:$8 sps:$4 sm:$0xff]   ;;  %v1251_v17 = vld [vmem:[%s1805_s3 + $0x14] ss:$8 sps:$4 sm:$0xff]  }
   0x9   :  { %v1221_v18 = vld [vmem:[%s1804_s1 + $0xe4] ss:$16 sps:$4 sm:$0xff]   ;;  %746 = vmatprep.subr.bf16.mxu0 %v1248_v15  ;;  %v1253_v19 = vld [vmem:[%s1805_s3 + $0x10] ss:$8 sps:$4 sm:$0xff]   ;;  %v1256_v23 = vld [vmem:[%s1805_s3 + $0x20] ss:$8 sps:$4 sm:$0xff]   ;;  %v72_v15 = vlaneseq }
   0xa   :  { %747 = vmatpush1.bf16.msra.mxu0 %v1250_v16  ;;  %v1254_v20 = vld [vmem:[%s1805_s3 + $0x24] ss:$8 sps:$4 sm:$0xff]   ;;  %v1223_v21 = vld [vmem:[%s1804_s1 + $0xe0] ss:$16 sps:$4 sm:$0xff]   ;;  %v1257_v25 = vld [vmem:[%s1805_s3 + $0x34] ss:$8 sps:$4 sm:$0xff]  }
   0xb   :  { %257 = vmatpush1.bf16.msra.mxu1 %v1208_v6  ;;  %748 = vmatprep.subr.bf16.mxu0 %v1251_v17  ;;  %v1492_v24 = vld [vmem:[%s1806_s0] sm:$0xf]  ;;  %v1259_v28 = vld [vmem:[%s1805_s3 + $0x30] ss:$8 sps:$4 sm:$0xff]   ;;  %v1260_v29 = vld [vmem:[%s1805_s3 + $0x44] ss:$8 sps:$4 sm:$0xff]  }
   0xc   :  { %258 = vmatprep.subr.bf16.mxu1 %v1209_v7  ;;  %v1262_v32 = vld [vmem:[%s1805_s3 + $0x40] ss:$8 sps:$4 sm:$0xff]   ;;  %v1263_v34 = vld [vmem:[%s1805_s3 + $0x54] ss:$8 sps:$4 sm:$0xff]   ;;  %v1265_v36 = vld [vmem:[%s1805_s3 + $0x50] ss:$8 sps:$4 sm:$0xff]  }
   0xd   :  { %v1266_v37 = vld [vmem:[%s1805_s3 + $0x64] ss:$8 sps:$4 sm:$0xff]   ;;  %v1233_v38 = vld [vmem:[%s1804_s1 + $0x68] ss:$16 sps:$4 sm:$0xff]   ;;  %v1269_v41 = vld [vmem:[%s1805_s3 + $0x74] ss:$8 sps:$4 sm:$0xff]  }
   0xe   :  { %749 = vmatpush1.bf16.msra.mxu0 %v1253_v19  ;;  %v1238_v39 = vld [vmem:[%s1804_s1 + $0x8c] ss:$16 sps:$4 sm:$0xff]   ;;  %v1268_v40 = vld [vmem:[%s1805_s3 + $0x60] ss:$8 sps:$4 sm:$0xff]   ;;  %v1271_v44 = vld [vmem:[%s1805_s3 + $0x70] ss:$8 sps:$4 sm:$0xff]  }
   0xf   :  { %259 = vmatpush1.bf16.msra.mxu1 %v1211_v8  ;;  %750 = vmatprep.subr.bf16.mxu0 %v1254_v20  ;;  %v1236_v42 = vld [vmem:[%s1804_s1 + $0x88] ss:$16 sps:$4 sm:$0xff]   ;;  %v1241_v43 = vld [vmem:[%s1804_s1 + $0xac] ss:$16 sps:$4 sm:$0xff]   ;;  %v1344_v3 = vld [vmem:[%s1807_s5 + $0x40] sm:$0xff]   ;;  %v1658_v16 = vshrl.u32 %v72_v15, 7 }
  0x10   :  { %260 = vmatprep.subr.bf16.mxu1 %v1212_v9  ;;  %v1272_v45 = vld [vmem:[%s1805_s3 + $0x84] ss:$8 sps:$4 sm:$0xff]   ;;  %v1239_v46 = vld [vmem:[%s1804_s1 + $0xa8] ss:$16 sps:$4 sm:$0xff]   ;;  %v1275_v49 = vld [vmem:[%s1805_s3 + $0x94] ss:$8 sps:$4 sm:$0xff]  }
  0x11   :  { %v1244_v47 = vld [vmem:[%s1804_s1 + $0xcc] ss:$16 sps:$4 sm:$0xff]   ;;  %v1274_v48 = vld [vmem:[%s1805_s3 + $0x80] ss:$8 sps:$4 sm:$0xff]   ;;  %v1277_v52 = vld [vmem:[%s1805_s3 + $0x90] ss:$8 sps:$4 sm:$0xff]  }
  0x12   :  { %751 = vmatpush1.bf16.msra.mxu0 %v1256_v23  ;;  %v1242_v50 = vld [vmem:[%s1804_s1 + $0xc8] ss:$16 sps:$4 sm:$0xff]   ;;  %v1247_v51 = vld [vmem:[%s1804_s1 + $0xec] ss:$16 sps:$4 sm:$0xff]   ;;  %v1345_v4 = vld [vmem:[%s1807_s5] sm:$0xff]   ;;  %v74_v17 = vsub.s32 0, %v1658_v16 }
  0x13   :  { %261 = vmatpush1.bf16.msra.mxu1 %v1214_v10  ;;  %752 = vmatprep.subr.bf16.mxu0 %v1257_v25  ;;  %v1278_v53 = vld [vmem:[%s1805_s3 + $0xa4] ss:$8 sps:$4 sm:$0xff]   ;;  %v1245_v54 = vld [vmem:[%s1804_s1 + $0xe8] ss:$16 sps:$4 sm:$0xff]   ;;  %v1281_v56 = vld [vmem:[%s1805_s3 + $0xb4] ss:$8 sps:$4 sm:$0xff]  }
  0x14   :  { %262 = vmatprep.subr.bf16.mxu1 %v1215_v11  ;;  %v1280_v55 = vld [vmem:[%s1805_s3 + $0xa0] ss:$8 sps:$4 sm:$0xff]   ;;  %v1283_v57 = vld [vmem:[%s1805_s3 + $0xb0] ss:$8 sps:$4 sm:$0xff]   ;;  %v1284_v58 = vld [vmem:[%s1805_s3 + $0xc4] ss:$8 sps:$4 sm:$0xff]  }
  0x15   :  { %v1286_v59 = vld [vmem:[%s1805_s3 + $0xc0] ss:$8 sps:$4 sm:$0xff]   ;;  %v1287_v60 = vld [vmem:[%s1805_s3 + $0xd4] ss:$8 sps:$4 sm:$0xff]   ;;  %v1289_v61 = vld [vmem:[%s1805_s3 + $0xd0] ss:$8 sps:$4 sm:$0xff]  }
  0x16   :  { %753 = vmatpush1.bf16.msra.mxu0 %v1259_v28  ;;  %v1290_v62 = vld [vmem:[%s1805_s3 + $0xe4] ss:$8 sps:$4 sm:$0xff]   ;;  %v1292_v63 = vld [vmem:[%s1805_s3 + $0xe0] ss:$8 sps:$4 sm:$0xff]   ;;  %v1293_v0 = vld [vmem:[%s1805_s3 + $0xf4] ss:$8 sps:$4 sm:$0xff]  }
  0x17   :  { %263 = vmatpush1.bf16.msra.mxu1 %v1217_v12  ;;  %754 = vmatprep.subr.bf16.mxu0 %v1260_v29  ;;  %v1298_v2 = vld [vmem:[%s1805_s3 + $0x104] ss:$8 sps:$4 sm:$0xff]   ;;  %v1348_v7 = vld [vmem:[%s1807_s5 + $0x50] sm:$0xff]   ;;  %v1350_v9 = vld [vmem:[%s1807_s5 + $0x58] sm:$0xff]   ;;  %v78_v19 = vsub.s32 1, %v1658_v16 }
  0x18   :  { %264 = vmatprep.subr.bf16.mxu1 %v1218_v13  ;;  %v1346_v5 = vld [vmem:[%s1807_s5 + $0x48] sm:$0xff]   ;;  %v1349_v8 = vld [vmem:[%s1807_s5 + $0x10] sm:$0xff]   ;;  %v1351_v10 = vld [vmem:[%s1807_s5 + $0x18] sm:$0xff]  }
  0x19   :  { %v1347_v6 = vld [vmem:[%s1807_s5 + $0x8] sm:$0xff]   ;;  %v1352_v11 = vld [vmem:[%s1807_s5 + $0x60] sm:$0xff]  }
  0x1a   :  { %755 = vmatpush1.bf16.msra.mxu0 %v1262_v32  ;;  %v1353_v12 = vld [vmem:[%s1807_s5 + $0x20] sm:$0xff]   ;;  %v1354_v13 = vld [vmem:[%s1807_s5 + $0x68] sm:$0xff]  }
  0x1b   :  { %265 = vmatpush1.bf16.msra.mxu1 %v1220_v14  ;;  %756 = vmatprep.subr.bf16.mxu0 %v1263_v34  ;;  %v1355_v14 = vld [vmem:[%s1807_s5 + $0x28] sm:$0xff]  }
  0x1c   :  { %266 = vmatprep.subr.bf16.mxu1 %v1221_v18  ;;  %v1664_v18 = vld [vmem:[%s1808_s2] sm:$0xf] }
  0x1d   :  { %v75_v20 = vrot.slane %v1664_v18, %v74_v17 }
  0x1e   :  { %757 = vmatpush1.bf16.msra.mxu0 %v1265_v36  ;;  %v1299_v36 = vld [vmem:[%s1805_s3 + $0x110] ss:$8 sps:$4 sm:$0xff]  }
  0x1f   :  { %267 = vmatpush1.bf16.msra.mxu1 %v1223_v21  ;;  %758 = vmatprep.subr.bf16.mxu0 %v1266_v37  ;;  %v79_v21 = vrot.slane %v1664_v18, %v78_v19  ;;  %v1304_v37 = vld [vmem:[%s1805_s3 + $0x124] ss:$8 sps:$4 sm:$0xff]  }
  0x20   :  { %293 = vmatprep.subr.bf16.mxu1 %v1226_v22 }
  0x22   :  { %285 = vmatmul.mubr.bf16.vlgmr.msra.gmra.mrb[0].mxu1 %v1492_v24  ;;  %759 = vmatpush1.bf16.msra.mxu0 %v1268_v40  ;;  %v1305_v40 = vld [vmem:[%s1805_s3 + $0x130] ss:$8 sps:$4 sm:$0xff]  }
  0x23   :  { %294 = vmatpush1.bf16.msra.mxu1 %v1224_v26  ;;  %325 = vmatprep.mubr.bf16.mxu1 %v1364_v1  ;;  %v1295_v1 = vld [vmem:[%s1805_s3 + $0xf0] ss:$8 sps:$4 sm:$0xff]  }
  0x24   :  { %295 = vmatprep.subr.bf16.mxu1 %v1229_v27  ;;  %760 = vmatprep.subr.bf16.mxu0 %v1269_v41  ;;  %v1310_v41 = vld [vmem:[%s1805_s3 + $0x144] ss:$8 sps:$4 sm:$0xff]  }
  0x26   :  { %761 = vmatpush1.bf16.msra.mxu0 %v1271_v44  ;;  %v86_v44 = vsub.s32 3, %v1658_v16 }
  0x27   :  { %296 = vmatpush1.bf16.msra.mxu1 %v1227_v30  ;;  %762 = vmatprep.subr.bf16.mxu0 %v1272_v45  ;;  %v1311_v45 = vld [vmem:[%s1805_s3 + $0x150] ss:$8 sps:$4 sm:$0xff]  }
  0x28   :  { %297 = vmatprep.subr.bf16.mxu1 %v1232_v31 }
  0x2a   :  { %763 = vmatpush1.bf16.msra.mxu0 %v1274_v48  ;;  %v1314_v48 = vld [vmem:[%s1805_s3 + $0x160] ss:$8 sps:$4 sm:$0xff]  }
  0x2b   :  { %298 = vmatpush1.bf16.msra.mxu1 %v1230_v33  ;;  %764 = vmatprep.subr.bf16.mxu0 %v1275_v49  ;;  %v1296_v33 = vld [vmem:[%s1805_s3 + $0x100] ss:$8 sps:$4 sm:$0xff]   ;;  %v1319_v49 = vld [vmem:[%s1805_s3 + $0x174] ss:$8 sps:$4 sm:$0xff]  }
  0x2c   :  { %299 = vmatprep.subr.bf16.mxu1 %v1235_v35  ;;  %v1301_v35 = vld [vmem:[%s1805_s3 + $0x114] ss:$8 sps:$4 sm:$0xff]  }
  0x2e   :  { %765 = vmatpush1.bf16.msra.mxu0 %v1277_v52 }
  0x2f   :  { %300 = vmatpush1.bf16.msra.mxu1 %v1233_v38  ;;  %766 = vmatprep.subr.bf16.mxu0 %v1278_v53  ;;  %v1302_v38 = vld [vmem:[%s1805_s3 + $0x120] ss:$8 sps:$4 sm:$0xff]  }
  0x30   :  { %301 = vmatprep.subr.bf16.mxu1 %v1238_v39  ;;  %v1307_v39 = vld [vmem:[%s1805_s3 + $0x134] ss:$8 sps:$4 sm:$0xff]  }
  0x32   :  { %767 = vmatpush1.bf16.msra.mxu0 %v1280_v55 }
  0x33   :  { %302 = vmatpush1.bf16.msra.mxu1 %v1236_v42  ;;  %768 = vmatprep.subr.bf16.mxu0 %v1281_v56  ;;  %v1308_v42 = vld [vmem:[%s1805_s3 + $0x140] ss:$8 sps:$4 sm:$0xff]   ;;  %v1322_v56 = vld [vmem:[%s1805_s3 + $0x184] ss:$8 sps:$4 sm:$0xff]  }
  0x34   :  { %303 = vmatprep.subr.bf16.mxu1 %v1241_v43  ;;  %v1313_v43 = vld [vmem:[%s1805_s3 + $0x154] ss:$8 sps:$4 sm:$0xff]  }
  0x36   :  { %769 = vmatpush1.bf16.msra.mxu0 %v1283_v57 }
  0x37   :  { %304 = vmatpush1.bf16.msra.mxu1 %v1239_v46  ;;  %770 = vmatprep.subr.bf16.mxu0 %v1284_v58  ;;  %v1316_v46 = vld [vmem:[%s1805_s3 + $0x164] ss:$8 sps:$4 sm:$0xff]  }
  0x38   :  { %305 = vmatprep.subr.bf16.mxu1 %v1244_v47  ;;  %v87_v47 = vrot.slane %v1664_v18, %v86_v44 }
  0x3a   :  { %771 = vmatpush1.bf16.msra.mxu0 %v1286_v59  ;;  %v1320_v59 = vld [vmem:[%s1805_s3 + $0x180] ss:$8 sps:$4 sm:$0xff]  }
  0x3b   :  { %306 = vmatpush1.bf16.msra.mxu1 %v1242_v50  ;;  %772 = vmatprep.subr.bf16.mxu0 %v1287_v60 }
  0x3c   :  { %307 = vmatprep.subr.bf16.mxu1 %v1247_v51 }
  0x3e   :  { %773 = vmatpush1.bf16.msra.mxu0 %v1289_v61  ;;  %v1325_v61 = vld [vmem:[%s1805_s3 + $0x194] ss:$8 sps:$4 sm:$0xff]  }
  0x3f   :  { %308 = vmatpush1.bf16.msra.mxu1 %v1245_v54  ;;  %774 = vmatprep.subr.bf16.mxu0 %v1290_v62  ;;  %v1317_v54 = vld [vmem:[%s1805_s3 + $0x170] ss:$8 sps:$4 sm:$0xff]  }
  0x40   :  { %1171 = vmatprep.subr.bf16.mxu1 %v1344_v3  ;;  %v1323_v62 = vld [vmem:[%s1805_s3 + $0x190] ss:$8 sps:$4 sm:$0xff]   ;;  %v1334_v3 = vld [vmem:[%s1805_s3 + $0x1c4] ss:$8 sps:$4 sm:$0xff]  }
  0x42   :  { %326 = vmatmul.mubr.bf16.vlgmr.msra.gmra.mrb[4].mxu1 %v1492_v24  ;;  %775 = vmatpush1.bf16.msra.mxu0 %v1292_v63  ;;  %v1328_v63 = vld [vmem:[%s1805_s3 + $0x1a4] ss:$8 sps:$4 sm:$0xff]  }
  0x43   :  { %776 = vmatprep.subr.bf16.mxu0 %v1293_v0  ;;  %1172 = vmatpush3.bf16.msra.mxu1 %v1345_v4  ;;  %v1326_v0 = vld [vmem:[%s1805_s3 + $0x1a0] ss:$8 sps:$4 sm:$0xff]   ;;  %v82_v4 = vsub.s32 2, %v1658_v16  ;;  %v16_v16 = vstv %s1810_s8 }
  0x44   :  { %1173 = vmatprep.subr.bf16.mxu1 %v1346_v5  ;;  %v1332_v5 = vld [vmem:[%s1805_s3 + $0x1c0] ss:$8 sps:$4 sm:$0xff]   ;;  %17 = vst [vmem:[#allocation2] sm:$0x1] %v16_v16 }
  0x46   :  { %777 = vmatpush1.bf16.msra.mxu0 %v1295_v1  ;;  %v1331_v1 = vld [vmem:[%s1805_s3 + $0x1b4] ss:$8 sps:$4 sm:$0xff]  }
  0x47   :  { %787 = vmatprep.subr.bf16.mxu0 %v1298_v2  ;;  %1174 = vmatpush3.bf16.msra.mxu1 %v1347_v6  ;;  %v1329_v2 = vld [vmem:[%s1805_s3 + $0x1b0] ss:$8 sps:$4 sm:$0xff]   ;;  %v1337_v6 = vld [vmem:[%s1805_s3 + $0x1d4] ss:$8 sps:$4 sm:$0xff]  }
  0x48   :  { %1175 = vmatprep.subr.bf16.mxu1 %v1348_v7  ;;  %v83_v7 = vrot.slane %v1664_v18, %v82_v4 }
  0x4b   :  { %1176 = vmatpush3.bf16.msra.mxu1 %v1349_v8  ;;  %v1335_v8 = vld [vmem:[%s1805_s3 + $0x1d0] ss:$8 sps:$4 sm:$0xff]  }
  0x4c   :  { %1177 = vmatprep.subr.bf16.mxu1 %v1350_v9  ;;  %v1340_v9 = vld [vmem:[%s1805_s3 + $0x1e4] ss:$8 sps:$4 sm:$0xff]  }
  0x4f   :  { %1178 = vmatpush3.bf16.msra.mxu1 %v1351_v10 }
  0x50   :  { %1179 = vmatprep.subr.bf16.mxu1 %v1352_v11  ;;  %v1338_v11 = vld [vmem:[%s1805_s3 + $0x1e0] ss:$8 sps:$4 sm:$0xff]  }
  0x53   :  { %1180 = vmatpush3.bf16.msra.mxu1 %v1353_v12  ;;  %v1343_v12 = vld [vmem:[%s1805_s3 + $0x1f4] ss:$8 sps:$4 sm:$0xff]  }
  0x54   :  { %1181 = vmatprep.subr.bf16.mxu1 %v1354_v13 }
  0x57   :  { %1182 = vmatpush3.bf16.msra.mxu1 %v1355_v14  ;;  %v1341_v14 = vld [vmem:[%s1805_s3 + $0x1f0] ss:$8 sps:$4 sm:$0xff]  }
  0xf5   :  { %v286_v22 = vpop.f32.mrb[0].mxu1 }
  0xf6   :  { %v287_v23 = vadd.f32 %v286_v22, %v75_v20  ;;  %v288_v24 = vpop.f32.mrb[1].mxu1  ;;  %v1356_v20 = vld [vmem:[%s1807_s5 + $0x70] sm:$0xff]   ;;  %v1358_v22 = vld [vmem:[%s1807_s5 + $0x78] sm:$0xff]  }
  0xf7   :  { %v289_v25 = vadd.f32 %v288_v24, %v79_v21  ;;  %v290_v26 = vpop.f32.mrb[2].mxu1  ;;  %v1357_v21 = vld [vmem:[%s1807_s5 + $0x30] sm:$0xff]   ;;  %1183 = vmatprep.subr.bf16.mxu1 %v1356_v20  ;;  %v414_v24 = vld [vmem:[%s1809_s4] sm:$0x3] }
  0xf8   :  { %vm334_vm0 = vcmp.gt.f32.partialorder %v287_v23, 0.0  ;;  %v338_v27 = vmul.f32 0.01, %v287_v23  ;;  %v291_v28 = vpop.f32.mrb[3].mxu1  ;;  %1184 = vmatpush3.bf16.msra.mxu1 %v1357_v21  ;;  %v423_v26 = vrot.slane %v414_v24, %v78_v19  ;;  %v1150_v19 = vld [vmem:[%s1811_s6] ss:$0 sm:$0xff] }
  0xf9   :  { %vm335_vm1 = vcmp.gt.f32.partialorder %v289_v25, 0.0  ;;  %v339_v29 = vmul.f32 0.01, %v289_v25  ;;  %1185 = vmatprep.subr.bf16.mxu1 %v1358_v22 }
  0xfa   :  { %v342_v30 = vsel %vm334_vm0, %v287_v23, %v338_v27  ;;  %v1359_v23 = vld [vmem:[%s1807_s5 + $0x38] sm:$0xff]  }
  0xfb   :  { %v343_v31 = vsel %vm335_vm1, %v289_v25, %v339_v29  ;;  %v346_v34 = vpack.c.bf16 %v342_v30, %v342_v30  ;;  %v419_v25 = vrot.slane %v414_v24, %v74_v17 }
  0xfc   :  { %v347_v32 = vpack.c.bf16 %v343_v31, %v343_v31  ;;  %1186 = vmatpush3.bf16.msra.mxu1 %v1359_v23 }
  0xfe   :  { %778 = vmatprep.mubr.bf16.mxu0 %v347_v32 }
  0xff   :  { %779 = vmatmul.mubr.bf16.vlgmr.msra.gmra.mrb[0].mxu0 %v346_v34 }
 0x100   :  { %788 = vmatpush1.bf16.msra.mxu0 %v1296_v33 }
 0x101   :  { %789 = vmatprep.subr.bf16.mxu0 %v1301_v35 }
 0x104   :  { %790 = vmatpush1.bf16.msra.mxu0 %v1299_v36 }
 0x105   :  { %791 = vmatprep.subr.bf16.mxu0 %v1304_v37 }
 0x108   :  { %792 = vmatpush1.bf16.msra.mxu0 %v1302_v38 }
 0x109   :  { %793 = vmatprep.subr.bf16.mxu0 %v1307_v39 }
 0x10c   :  { %794 = vmatpush1.bf16.msra.mxu0 %v1305_v40 }
 0x10d   :  { %795 = vmatprep.subr.bf16.mxu0 %v1310_v41 }
 0x110   :  { %796 = vmatpush1.bf16.msra.mxu0 %v1308_v42 }
 0x111   :  { %797 = vmatprep.subr.bf16.mxu0 %v1313_v43 }
 0x114   :  { %798 = vmatpush1.bf16.msra.mxu0 %v1311_v45  ;;  %v1167_v45 = vld [vmem:[%s1812_s7] ss:$0 sm:$0xff] }
 0x115   :  { %799 = vmatprep.subr.bf16.mxu0 %v1316_v46  ;;  %v327_v50 = vpop.f32.mrb[4].mxu1 }
 0x116   :  { %v329_v51 = vpop.f32.mrb[5].mxu1  ;;  %v328_v10 = vadd.f32 %v327_v50, %v83_v7 }
 0x117   :  { %v330_v52 = vadd.f32 %v329_v51, %v87_v47  ;;  %v331_v53 = vpop.f32.mrb[6].mxu1 }
 0x118   :  { %800 = vmatpush1.bf16.msra.mxu0 %v1314_v48  ;;  %v332_v55 = vpop.f32.mrb[7].mxu1  ;;  %v340_v13 = vmul.f32 0.01, %v328_v10  ;;  %vm336_vm3 = vcmp.gt.f32.partialorder %v328_v10, 0.0  ;;  %v1168_v48 = vld [vmem:[#allocation2] ss:$0 sm:$0xff] }
 0x119   :  { %801 = vmatprep.subr.bf16.mxu0 %v1319_v49  ;;  %vm337_vm2 = vcmp.gt.f32.partialorder %v330_v52, 0.0  ;;  %v341_v57 = vmul.f32 0.01, %v330_v52 }
 0x11a   :  { %v344_v15 = vsel %vm336_vm3, %v328_v10, %v340_v13 }
 0x11b   :  { %v345_v58 = vsel %vm337_vm2, %v330_v52, %v341_v57  ;;  %v348_v18 = vpack.c.bf16 %v344_v15, %v344_v15 }
 0x11c   :  { %802 = vmatpush1.bf16.msra.mxu0 %v1317_v54  ;;  %v349_v60 = vpack.c.bf16 %v345_v58, %v345_v58 }
 0x11d   :  { %803 = vmatprep.subr.bf16.mxu0 %v1322_v56 }
 0x11e   :  { %819 = vmatprep.mubr.bf16.mxu0 %v349_v60 }
 0x120   :  { %804 = vmatpush1.bf16.msra.mxu0 %v1320_v59 }
 0x121   :  { %805 = vmatprep.subr.bf16.mxu0 %v1325_v61 }
 0x124   :  { %806 = vmatpush1.bf16.msra.mxu0 %v1323_v62 }
 0x125   :  { %807 = vmatprep.subr.bf16.mxu0 %v1328_v63 }
 0x128   :  { %808 = vmatpush1.bf16.msra.mxu0 %v1326_v0 }
 0x129   :  { %809 = vmatprep.subr.bf16.mxu0 %v1331_v1 }
 0x12c   :  { %810 = vmatpush1.bf16.msra.mxu0 %v1329_v2 }
 0x12d   :  { %811 = vmatprep.subr.bf16.mxu0 %v1334_v3 }
 0x130   :  { %812 = vmatpush1.bf16.msra.mxu0 %v1332_v5 }
 0x131   :  { %813 = vmatprep.subr.bf16.mxu0 %v1337_v6 }
 0x134   :  { %814 = vmatpush1.bf16.msra.mxu0 %v1335_v8 }
 0x135   :  { %815 = vmatprep.subr.bf16.mxu0 %v1340_v9 }
 0x138   :  { %816 = vmatpush1.bf16.msra.mxu0 %v1338_v11 }
 0x139   :  { %817 = vmatprep.subr.bf16.mxu0 %v1343_v12 }
 0x13c   :  { %818 = vmatpush1.bf16.msra.mxu0 %v1341_v14 }
 0x13f   :  { %820 = vmatmul.mubr.bf16.vlgmr.msra.gmra.mrb[0].mxu0 %v348_v18 }
 0x212   :  { %v821_v27 = vpop.f32.mrb[0].mxu0 }
 0x213   :  { %v1193_v28 = vadd.f32 %v821_v27, %v419_v25  ;;  %v823_v29 = vpop.f32.mrb[1].mxu0 }
 0x214   :  { %v1194_v30 = vadd.f32 %v823_v29, %v423_v26  ;;  %v825_v31 = vpop.f32.mrb[2].mxu0 }
 0x215   :  { %vm828_vm4 = vcmp.gt.f32.partialorder %v1193_v28, 0.0  ;;  %v830_v32 = vmul.f32 0.01, %v1193_v28  ;;  %v826_v33 = vpop.f32.mrb[3].mxu0 }
 0x216   :  { %vm829_vm5 = vcmp.gt.f32.partialorder %v1194_v30, 0.0  ;;  %v831_v34 = vmul.f32 0.01, %v1194_v30 }
 0x217   :  { %v832_v35 = vsel %vm828_vm4, %v1193_v28, %v830_v32 }
 0x218   :  { %v833_v36 = vsel %vm829_vm5, %v1194_v30, %v831_v34  ;;  %v834_v38 = vpack.c.bf16 %v832_v35, %v832_v35 }
 0x219   :  { %v835_v37 = vpack.c.bf16 %v833_v36, %v833_v36 }
 0x21b   :  { %1003 = vmatprep.mubr.bf16.mxu1 %v835_v37 }
 0x21c   :  { %1004 = vmatmul.mubr.bf16.vlgmr.msra.gmra.mrb[8].mxu1 %v834_v38 }
 0x2ef   :  { %v1187_v17 = vpop.f32.mrb[8].mxu1 }
 0x2f0   :  { %v1188_v39 = vpop.f32.mrb[9].mxu1 }
 0x2f1   :  { %v1189_v40 = vadd.f32 %v1188_v39, %v1187_v17  ;;  %v1190_v41 = vpop.f32.mrb[10].mxu1 }
 0x2f2   :  { %v1191_v42 = vpop.f32.mrb[11].mxu1 }
 0x2f3   :  { %v1006_v43 = vadd.f32 %v1189_v40, %v1150_v19 }
 0x2f5   :  { %vm1011_vm6 = vcmp.gt.f32.partialorder %v1006_v43, 0.0  ;;  %v1012_v44 = vmul.f32 0.01, %v1006_v43 }
 0x2f7   :  { %v1013_v46 = vsel %vm1011_vm6, %v1006_v43, %v1012_v44 }
 0x2f8   :  { %v1021_v47 = vmul.f32 %v1167_v45, %v1013_v46 }
 0x2fa   :  { %1022 = vadd.xlane.f32.xlu0 %v1021_v47 }
 0x387   :  { %v1023_v49 = vpop.xlane.xlu0 %1022 }
 0x388   :  { %v1031_v50 = vadd.f32 %v1168_v48, %v1023_v49 }
 0x38a   :  { %vm1032_vm7 = vcmp.gt.f32.partialorder %v1031_v50, 0.0  ;;  %v1033_v51 = vmul.f32 0.01, %v1031_v50 }
 0x38c   :  { %v1034_v52 = vsel %vm1032_vm7, %v1031_v50, %v1033_v51 }
 0x38d   :  { %1036 = vst.msk [vmem:[%s1813_s9] sm:$0xff] %vm1035_vm8, %v1034_v52  ;;  %v1169_v53 = vmul.f32 -1.442695, %v1034_v52 }
 0x38f   :  { %1360 = vpow2.f32 %v1169_v53 }
 0x399   :  { %v1361_v54 = vpop.eup %1360 }
 0x39a   :  { %v1040_v55 = vadd.f32 1.0, %v1361_v54 }
 0x39c   :  { %1362 = vrcp.f32 %v1040_v55 }
 0x3a6   :  { %v1363_v56 = vpop.eup %1362 }
 0x3a7   :  { %v1170_v57 = vadd.f32 -0.5, %v1363_v56 }
 0x3a9   :  { %v1044_v58 = vmul.f32 2.0, %v1170_v57 }
 0x3ab   :  { %1045 = vst.msk [vmem:[%s1814_s10] sm:$0xff] %vm1035_vm8, %v1044_v58 }

</bundles_post_ra>
